<compile_context>
chip_gen: v6e
topology: v6e:2x2x1
jax: 0.10.0
libtpu: 0.0.40
codegen_flags: <defaults>
</compile_context>

<pallas_src>
import functools

import jax
import jax.numpy as jnp
from jax.experimental import pallas as pl
from jax.experimental.pallas import tpu as pltpu

_INV_SQRT2 = 0.7071067811865476        # exact-erf GELU constant
_SQRT_2_OVER_PI = 0.7978845608028654   # tanh-approx GELU constant


def _gelu_exact_f32(x):
    # PyTorch nn.GELU() default (exact erf).
    return 0.5 * x * (1.0 + jax.lax.erf(x * _INV_SQRT2))


def _gelu_tanh_f32(x):
    # tanh approximation — tanh runs on the EUP (separate VLIW slot).
    return 0.5 * x * (1.0 + jnp.tanh(_SQRT_2_OVER_PI * (x + 0.044715 * x * x * x)))


# --------------------------------------------------------------------------- #
# Kernel
# --------------------------------------------------------------------------- #
def expert_kernel(x_ref, w1_ref, b1_ref, w2_ref, b2_ref, o_ref, acc_ref, *,
                  approximate_gelu):
    # x_ref:  (tm, H)   token tile (native dtype)           -- f-invariant
    # w1_ref: (H, tf)   first-layer weight chunk
    # b1_ref: (1, tf)   first-layer bias chunk
    # w2_ref: (tf, H)   second-layer weight chunk
    # b2_ref: (1, H)    second-layer bias                   -- grid-invariant
    # o_ref:  (tm, H)   output tile (written once, at finalize)
    # acc_ref:(tm, H)   f32 accumulator scratch (resident across the F axis)
    f = pl.program_id(1)

    @pl.when(f == 0)
    def _init():
        acc_ref[...] = jnp.zeros_like(acc_ref)

    # First matmul: native-dtype operands, f32 accumulation on the MXU.
    h = jnp.dot(x_ref[...], w1_ref[...], preferred_element_type=jnp.float32)
    h = h + b1_ref[...].astype(jnp.float32)
    h = _gelu_tanh_f32(h) if approximate_gelu else _gelu_exact_f32(h)

    # Second matmul: cast the activation back to the weight dtype so the MXU
    # runs at its native (e.g. bf16) rate; accumulate in f32.
    acc_ref[...] += jnp.dot(
        h.astype(w2_ref.dtype), w2_ref[...], preferred_element_type=jnp.float32
    )

    @pl.when(f == pl.num_programs(1) - 1)
    def _finalize():
        # Fold b2 here so the bias-add and the (tm, H) store happen once per
        # token tile (single lane-dense unmasked store).
        o_ref[...] = (acc_ref[...] + b2_ref[...].astype(jnp.float32)).astype(o_ref.dtype)


# --------------------------------------------------------------------------- #
# Device-aware tile selection
# --------------------------------------------------------------------------- #
@functools.lru_cache(maxsize=None)
def _device_vmem_bytes():
    """Physical per-core VMEM, with conservative fallbacks."""
    try:
        return int(pltpu.get_tpu_info().vmem_capacity_bytes)
    except Exception:
        pass
    try:
        kind = jax.devices()[0].device_kind.lower()
    except Exception:
        kind = ""
    if "v7" in kind:
        return 64 << 20
    return 128 << 20


@functools.lru_cache(maxsize=None)
def _token_tile_target():
    """Roofline-derived token tile target per generation."""
    try:
        kind = jax.devices()[0].device_kind.lower()
    except Exception:
        return 512
    if "v5 lite" in kind or "v5e" in kind or "v5lite" in kind:
        return 256   # v5e: bf16 at tm=256 is already HBM/MXU balanced
    return 512       # v6e / v7x: weight streaming wants tm >= 512


def _token_tile_candidates(n, target):
    """Descending multiples of 8, starting from min(target, padded N)."""
    n8 = max(8, ((n + 7) // 8) * 8)
    t = ((min(target, n8) + 7) // 8) * 8
    cands = []
    while t >= 8:
        cands.append(t)
        if t == 8:
            break
        t = max(8, (((t // 2) + 7) // 8) * 8)
    return cands


def _ffn_tile_candidates(ffn, target=1024):
    """(tf, padded_F) candidates, largest first; padding is at most 127 cols."""
    cands = []
    if ffn <= target:
        cands.append((ffn, ffn))            # full F, no padding
    f_pad = ((ffn + 127) // 128) * 128
    divs = []
    b = 128
    while b <= min(target, f_pad):
        if f_pad % b == 0:
            divs.append(b)
        b += 128
    for b in sorted(divs, reverse=True):
        if (b, f_pad) not in cands:
            cands.append((b, f_pad))
    if not cands:                            # unreachable, but stay safe
        cands.append((ffn, ffn))
    return cands


def _vmem_bytes_estimate(tm, tf, hidden, itemsize, single_io):
    """VMEM footprint for one grid step (double-buffered unless single_io)."""
    io_bufs = 1 if single_io else 2
    est = io_bufs * tm * hidden * itemsize          # x
    est += io_bufs * hidden * itemsize              # b2
    est += 2 * hidden * tf * itemsize               # w1 chunk
    est += 2 * tf * itemsize                        # b1 chunk
    est += 2 * tf * hidden * itemsize               # w2 chunk
    est += 2 * tm * hidden * itemsize               # output (double-buffered)
    est += tm * hidden * 4                          # f32 accumulator scratch
    est += 3 * tm * tf * 4                          # live f32 intermediate + temps
    return est


def _pick_tiles(n, hidden, ffn, itemsize, budget):
    """Keep tm as large as possible (weight re-use); shrink tf first."""
    tm_cands = _token_tile_candidates(n, _token_tile_target())
    tf_cands = _ffn_tile_candidates(ffn)
    for tm in tm_cands:
        for tf, f_pad in tf_cands:
            if _vmem_bytes_estimate(tm, tf, hidden, itemsize, True) <= budget:
                return tm, tf, f_pad
    tm = tm_cands[-1]
    tf, f_pad = tf_cands[-1]
    return tm, tf, f_pad


# --------------------------------------------------------------------------- #
# pallas_call wrapper
# --------------------------------------------------------------------------- #
@functools.partial(
    jax.jit,
    static_argnames=("tm", "tf", "fast_gelu", "single_buffer_io", "vmem_limit"),
)
def _expert_call(x, w1, b1, w2, b2, *, tm, tf, fast_gelu, single_buffer_io,
                 vmem_limit):
    n_pad, hidden = x.shape
    f_pad = w1.shape[1]
    grid = (n_pad // tm, f_pad // tf)   # reduction (F) axis last

    if single_buffer_io:
        # x and b2 are invariant along the inner F axis: a second buffer is
        # dead weight, so single-buffer them to free VMEM (matters on v7x).
        x_spec = pl.BlockSpec((tm, hidden), lambda i, f: (i, 0),
                              pipeline_mode=pl.Buffered(1))
        b2_spec = pl.BlockSpec((1, hidden), lambda i, f: (0, 0),
                               pipeline_mode=pl.Buffered(1))
    else:
        x_spec = pl.BlockSpec((tm, hidden), lambda i, f: (i, 0))
        b2_spec = pl.BlockSpec((1, hidden), lambda i, f: (0, 0))

    kernel = functools.partial(expert_kernel, approximate_gelu=fast_gelu)

    return pl.pallas_call(
        kernel,
        out_shape=jax.ShapeDtypeStruct((n_pad, hidden), x.dtype),
        grid_spec=pltpu.PrefetchScalarGridSpec(
            num_scalar_prefetch=0,
            grid=grid,
            in_specs=[
                x_spec,                                             # x tile
                pl.BlockSpec((hidden, tf), lambda i, f: (0, f)),    # w1 chunk
                pl.BlockSpec((1, tf), lambda i, f: (0, f)),         # b1 chunk
                pl.BlockSpec((tf, hidden), lambda i, f: (f, 0)),    # w2 chunk
                b2_spec,                                            # b2
            ],
            out_specs=pl.BlockSpec((tm, hidden), lambda i, f: (i, 0)),
            scratch_shapes=[pltpu.VMEM((tm, hidden), jnp.float32)],
        ),
        compiler_params=pltpu.CompilerParams(
            dimension_semantics=("parallel", "arbitrary"),
            vmem_limit_bytes=vmem_limit,
        ),
    )(x, w1, b1, w2, b2)


_SINGLE_BUFFER_IO_OK = None  # decided once at first call


def _call_with_fallback(*args, **kwargs):
    """Prefer single-buffered f-invariant specs; fall back once if rejected."""
    global _SINGLE_BUFFER_IO_OK
    if _SINGLE_BUFFER_IO_OK is None:
        try:
            out = _expert_call(*args, single_buffer_io=True, **kwargs)
            _SINGLE_BUFFER_IO_OK = True
            return out
        except Exception:
            _SINGLE_BUFFER_IO_OK = False
    return _expert_call(*args, single_buffer_io=_SINGLE_BUFFER_IO_OK, **kwargs)


def expert_forward(x, w1, b1, w2, b2, *, block_tokens=None, block_ffn=None,
                   fast_gelu=False):
    """x: [..., H]; w1: [H, F]; b1: [F]; w2: [F, H]; b2: [H]  ->  [..., H]."""
    orig_shape = x.shape
    hidden = orig_shape[-1]
    x2d = x.reshape(-1, hidden)
    n = x2d.shape[0]
    ffn = w1.shape[1]
    assert w1.shape == (hidden, ffn) and w2.shape == (ffn, hidden)
    b1 = b1.reshape(1, ffn)
    b2 = b2.reshape(1, hidden)

    itemsize = jnp.dtype(x.dtype).itemsize
    vmem_cap = _device_vmem_bytes()
    budget = int(vmem_cap * 0.85)

    tm_a, tf_a, f_pad_a = _pick_tiles(n, hidden, ffn, itemsize, budget)

    tm = block_tokens if block_tokens is not None else tm_a
    assert tm % 8 == 0, "token tile must be a sublane multiple"
    if block_ffn is not None:
        tf = block_ffn
        if tf == ffn:
            f_pad = ffn
        else:
            assert tf % 128 == 0, "block_ffn must be a multiple of 128 or == F"
            f_pad = pl.cdiv(ffn, tf) * tf
    else:
        tf, f_pad = tf_a, f_pad_a

    # Pad the token axis so the grid divides evenly; padded rows are sliced off.
    n_pad = pl.cdiv(n, tm) * tm
    if n_pad != n:
        x2d = jnp.pad(x2d, ((0, n_pad - n), (0, 0)))

    # Pad the FFN axis (zero w1 cols / b1 cols / w2 rows).  Exact: the padded
    # pre-activation is 0, gelu(0) = 0, and the padded w2 rows are zero.
    if f_pad != ffn:
        w1 = jnp.pad(w1, ((0, 0), (0, f_pad - ffn)))
        b1 = jnp.pad(b1, ((0, 0), (0, f_pad - ffn)))
        w2 = jnp.pad(w2, ((0, f_pad - ffn), (0, 0)))

    # VMEM limit follows the tile picker: 1.25x the estimate (never below
    # 32 MiB), capped at ~90% of physical VMEM.  No blanket 64 MiB cap.
    est = _vmem_bytes_estimate(tm, tf, hidden, itemsize, True)
    vmem_limit = int(min(int(vmem_cap * 0.9), max(est * 5 // 4, 32 << 20)))
    vmem_limit = max(vmem_limit, 16 << 20)

    out = _call_with_fallback(
        x2d, w1, b1, w2, b2,
        tm=tm, tf=tf, fast_gelu=fast_gelu, vmem_limit=vmem_limit,
    )
    return out[:n].reshape(orig_shape)


# --------------------------------------------------------------------------- #
# Parameter init + reference
# --------------------------------------------------------------------------- #
def init_expert_params(key, hidden_dim, mlp_multiplier, dtype=jnp.float32):
    """Deterministic init mirroring nn.Linear shapes (weights pre-transposed)."""
    ffn = mlp_multiplier * hidden_dim
    k1, k2, k3, k4 = jax.random.split(key, 4)
    lim1 = 1.0 / float(jnp.sqrt(hidden_dim))
    lim2 = 1.0 / float(jnp.sqrt(ffn))
    w1 = jax.random.uniform(k1, (hidden_dim, ffn), dtype, -lim1, lim1)
    b1 = jax.random.uniform(k2, (1, ffn), dtype, -lim1, lim1)
    w2 = jax.random.uniform(k3, (ffn, hidden_dim), dtype, -lim2, lim2)
    b2 = jax.random.uniform(k4, (1, hidden_dim), dtype, -lim2, lim2)
    return w1, b1, w2, b2


def _reference(x2d, w1, b1, w2, b2, approximate=False):
    hi = jax.lax.Precision.HIGHEST
    h = jnp.dot(x2d.astype(jnp.float32), w1.astype(jnp.float32), precision=hi)
    h = h + b1.astype(jnp.float32)
    h = _gelu_tanh_f32(h) if approximate else _gelu_exact_f32(h)
    return jnp.dot(h, w2.astype(jnp.float32), precision=hi) + b2.astype(jnp.float32)


# --------------------------------------------------------------------------- #
# Demo / self-test
# --------------------------------------------------------------------------- #
if __name__ == "__main__":
    key = jax.random.PRNGKey(0)
    k = jax.random.split(key, 8)

    # --- Case 1: module-spec shapes (B=2, S=8, H=32, mult=4), exact GELU ----
    batch, seq, hidden_dim, mlp_multiplier = 2, 8, 32, 4
    x = jax.random.normal(k[0], (batch, seq, hidden_dim), jnp.float32)
    w1, b1, w2, b2 = init_expert_params(k[1], hidden_dim, mlp_multiplier)

    y = expert_forward(x, w1, b1, w2, b2)
    jax.block_until_ready(y)
    yref = _reference(x.reshape(-1, hidden_dim), w1, b1, w2, b2).reshape(x.shape)
    assert jnp.allclose(y, yref, atol=2e-3, rtol=2e-3), "case 1 mismatch"

    # --- Case 1b: fast (tanh) GELU path --------------------------------------
    yf = expert_forward(x, w1, b1, w2, b2, fast_gelu=True)
    jax.block_until_ready(yf)
    yfref = _reference(x.reshape(-1, hidden_dim), w1, b1, w2, b2,
                       approximate=True).reshape(x.shape)
    assert jnp.allclose(yf, yfref, atol=2e-3, rtol=2e-3), "case 1b mismatch"

    # --- Case 2: non-dividing F (144) + token padding, explicit tiles --------
    n2, hidden2, mult2 = 40, 48, 3                     # F = 144 -> padded to 256
    x2 = jax.random.normal(k[2], (n2, hidden2), jnp.float32)
    w1b, b1b, w2b, b2b = init_expert_params(k[3], hidden2, mult2)
    y2 = expert_forward(x2, w1b, b1b, w2b, b2b, block_tokens=16, block_ffn=128)
    jax.block_until_ready(y2)
    y2ref = _reference(x2, w1b, b1b, w2b, b2b)
    assert jnp.allclose(y2, y2ref, atol=2e-3, rtol=2e-3), "case 2 mismatch"

    # --- Case 3: bf16 operands (native MXU rate), f32 accumulation -----------
    n3, hidden3, mult3 = 32, 64, 4
    x3 = jax.random.normal(k[4], (n3, hidden3), jnp.float32).astype(jnp.bfloat16)
    w1c, b1c, w2c, b2c = init_expert_params(k[5], hidden3, mult3, dtype=jnp.bfloat16)
    y3 = expert_forward(x3, w1c, b1c, w2c, b2c)
    jax.block_until_ready(y3)
    y3ref = _reference(x3, w1c, b1c, w2c, b2c)
    err = float(jnp.max(jnp.abs(y3.astype(jnp.float32) - y3ref)))
    assert err < 1e-1, f"case 3 mismatch (max abs err {err})"

    print("KERNEL_OK")
</pallas_src>

<mosaic_0001>
module attributes {stable_mosaic.version = 11 : i64} {
  func.func @expert_kernel(%arg0: i32, %arg1: i32, %arg2: memref<16x32xf32, #tpu.memory_space<vmem>>, %arg3: memref<32x128xf32, #tpu.memory_space<vmem>>, %arg4: memref<1x128xf32, #tpu.memory_space<vmem>>, %arg5: memref<128x32xf32, #tpu.memory_space<vmem>>, %arg6: memref<1x32xf32, #tpu.memory_space<vmem>>, %arg7: memref<16x32xf32, #tpu.memory_space<vmem>>, %arg8: memref<16x32xf32, #tpu.memory_space<vmem>>) attributes {dimension_semantics = [#tpu.dimension_semantics<parallel>, #tpu.dimension_semantics<arbitrary>], iteration_bounds = array<i64: 1, 1>, scalar_prefetch = 0 : i64, scratch_operands = 1 : i64, tpu.core_type = #tpu.core_type<tc>, window_params = [{pipeline_mode = #tpu.pipeline_mode<synchronous>, transform_indices = @transform_0, window_bounds = array<i64: 16, 32>}, {transform_indices = @transform_1, window_bounds = array<i64: 32, 128>}, {transform_indices = @transform_2, window_bounds = array<i64: 1, 128>}, {transform_indices = @transform_3, window_bounds = array<i64: 128, 32>}, {pipeline_mode = #tpu.pipeline_mode<synchronous>, transform_indices = @transform_4, window_bounds = array<i64: 1, 32>}, {transform_indices = @transform_5, window_bounds = array<i64: 16, 32>}]} {
    %c0_i32 = arith.constant 0 : i32
    %0 = arith.cmpi eq, %arg1, %c0_i32 : i32
    %1 = arith.extui %0 : i1 to i32
    %c0_i32_0 = arith.constant 0 : i32
    %2 = arith.cmpi ne, %1, %c0_i32_0 : i32
    scf.if %2 {
      %cst_18 = arith.constant 0.000000e+00 : f32
      %25 = vector.broadcast %cst_18 : f32 to vector<16x32xf32>
      %c0_19 = arith.constant 0 : index
      %c0_20 = arith.constant 0 : index
      %26 = vector.load %arg8[%c0_19, %c0_20] : memref<16x32xf32, #tpu.memory_space<vmem>>, vector<16x32xf32>
      tpu.vector_store %arg8[%c0_19, %c0_20], %25 {strides = array<i32>} : memref<16x32xf32, #tpu.memory_space<vmem>>, vector<16x32xf32>,
    } else {
    }
    %c0 = arith.constant 0 : index
    %c0_1 = arith.constant 0 : index
    %3 = vector.load %arg2[%c0, %c0_1] : memref<16x32xf32, #tpu.memory_space<vmem>>, vector<16x32xf32>
    %c0_2 = arith.constant 0 : index
    %c0_3 = arith.constant 0 : index
    %4 = vector.load %arg3[%c0_2, %c0_3] : memref<32x128xf32, #tpu.memory_space<vmem>>, vector<32x128xf32>
    %cst = arith.constant dense<0.000000e+00> : vector<16x128xf32>
    %5 = tpu.matmul %3, %4, %cst {dimension_numbers = #tpu.dot_dimension_numbers<[1], [0], [0], [1], [0, 0, 1, 1], [], []>} : vector<16x32xf32>, vector<32x128xf32>, vector<16x128xf32> -> vector<16x128xf32>
    %c0_4 = arith.constant 0 : index
    %c0_5 = arith.constant 0 : index
    %6 = vector.load %arg4[%c0_4, %c0_5] : memref<1x128xf32, #tpu.memory_space<vmem>>, vector<1x128xf32>
    %7 = vector.broadcast %6 : vector<1x128xf32> to vector<16x128xf32>
    %8 = arith.addf %5, %7 : vector<16x128xf32>
    %cst_6 = arith.constant 5.000000e-01 : f32
    %9 = vector.broadcast %cst_6 : f32 to vector<16x128xf32>
    %10 = arith.mulf %9, %8 : vector<16x128xf32>
    %cst_7 = arith.constant 0.707106769 : f32
    %11 = vector.broadcast %cst_7 : f32 to vector<16x128xf32>
    %12 = arith.mulf %8, %11 : vector<16x128xf32>
    %13 = math.erf %12 : vector<16x128xf32>
    %cst_8 = arith.constant 1.000000e+00 : f32
    %14 = vector.broadcast %cst_8 : f32 to vector<16x128xf32>
    %15 = arith.addf %14, %13 : vector<16x128xf32>
    %16 = arith.mulf %10, %15 : vector<16x128xf32>
    %c0_9 = arith.constant 0 : index
    %c0_10 = arith.constant 0 : index
    %17 = vector.load %arg8[%c0_9, %c0_10] : memref<16x32xf32, #tpu.memory_space<vmem>>, vector<16x32xf32>
    %c0_11 = arith.constant 0 : index
    %c0_12 = arith.constant 0 : index
    %18 = vector.load %arg5[%c0_11, %c0_12] : memref<128x32xf32, #tpu.memory_space<vmem>>, vector<128x32xf32>
    %cst_13 = arith.constant dense<0.000000e+00> : vector<16x32xf32>
    %19 = tpu.matmul %16, %18, %cst_13 {dimension_numbers = #tpu.dot_dimension_numbers<[1], [0], [0], [1], [0, 0, 1, 1], [], []>} : vector<16x128xf32>, vector<128x32xf32>, vector<16x32xf32> -> vector<16x32xf32>
    %20 = arith.addf %17, %19 : vector<16x32xf32>
    %c0_14 = arith.constant 0 : index
    %c0_15 = arith.constant 0 : index
    %21 = vector.load %arg8[%c0_14, %c0_15] : memref<16x32xf32, #tpu.memory_space<vmem>>, vector<16x32xf32>
    tpu.vector_store %arg8[%c0_14, %c0_15], %20 {strides = array<i32>} : memref<16x32xf32, #tpu.memory_space<vmem>>, vector<16x32xf32>,
    %c0_i32_16 = arith.constant 0 : i32
    %22 = arith.cmpi eq, %arg1, %c0_i32_16 : i32
    %23 = arith.extui %22 : i1 to i32
    %c0_i32_17 = arith.constant 0 : i32
    %24 = arith.cmpi ne, %23, %c0_i32_17 : i32
    scf.if %24 {
      %c0_18 = arith.constant 0 : index
      %c0_19 = arith.constant 0 : index
      %25 = vector.load %arg8[%c0_18, %c0_19] : memref<16x32xf32, #tpu.memory_space<vmem>>, vector<16x32xf32>
      %c0_20 = arith.constant 0 : index
      %c0_21 = arith.constant 0 : index
      %26 = vector.load %arg6[%c0_20, %c0_21] : memref<1x32xf32, #tpu.memory_space<vmem>>, vector<1x32xf32>
      %27 = vector.broadcast %26 : vector<1x32xf32> to vector<16x32xf32>
      %28 = arith.addf %25, %27 : vector<16x32xf32>
      %c0_22 = arith.constant 0 : index
      %c0_23 = arith.constant 0 : index
      %29 = vector.load %arg7[%c0_22, %c0_23] : memref<16x32xf32, #tpu.memory_space<vmem>>, vector<16x32xf32>
      tpu.vector_store %arg7[%c0_22, %c0_23], %28 {strides = array<i32>} : memref<16x32xf32, #tpu.memory_space<vmem>>, vector<16x32xf32>,
    } else {
    }
    return
  }
  func.func @transform_0(%arg0: i32, %arg1: i32) -> (i32, i32) {
    %c0_i32 = arith.constant 0 : i32
    %c0_i32_0 = arith.constant 0 : i32
    return %arg0, %c0_i32 : i32, i32
  }
  func.func @transform_1(%arg0: i32, %arg1: i32) -> (i32, i32) {
    %c0_i32 = arith.constant 0 : i32
    %c0_i32_0 = arith.constant 0 : i32
    return %c0_i32, %arg1 : i32, i32
  }
  func.func @transform_2(%arg0: i32, %arg1: i32) -> (i32, i32) {
    %c0_i32 = arith.constant 0 : i32
    %c0_i32_0 = arith.constant 0 : i32
    return %c0_i32, %arg1 : i32, i32
  }
  func.func @transform_3(%arg0: i32, %arg1: i32) -> (i32, i32) {
    %c0_i32 = arith.constant 0 : i32
    %c0_i32_0 = arith.constant 0 : i32
    return %arg1, %c0_i32 : i32, i32
  }
  func.func @transform_4(%arg0: i32, %arg1: i32) -> (i32, i32) {
    %c0_i32 = arith.constant 0 : i32
    %c0_i32_0 = arith.constant 0 : i32
    %c0_i32_1 = arith.constant 0 : i32
    return %c0_i32, %c0_i32_0 : i32, i32
  }
  func.func @transform_5(%arg0: i32, %arg1: i32) -> (i32, i32) {
    %c0_i32 = arith.constant 0 : i32
    %c0_i32_0 = arith.constant 0 : i32
    return %arg0, %c0_i32 : i32, i32
  }
}

module attributes {stable_mosaic.version = 11 : i64} {
  func.func @expert_kernel(%arg0: i32, %arg1: i32, %arg2: memref<16x32xf32, #tpu.memory_space<vmem>>, %arg3: memref<32x128xf32, #tpu.memory_space<vmem>>, %arg4: memref<1x128xf32, #tpu.memory_space<vmem>>, %arg5: memref<128x32xf32, #tpu.memory_space<vmem>>, %arg6: memref<1x32xf32, #tpu.memory_space<vmem>>, %arg7: memref<16x32xf32, #tpu.memory_space<vmem>>, %arg8: memref<16x32xf32, #tpu.memory_space<vmem>>) attributes {dimension_semantics = [#tpu.dimension_semantics<parallel>, #tpu.dimension_semantics<arbitrary>], iteration_bounds = array<i64: 1, 1>, scalar_prefetch = 0 : i64, scratch_operands = 1 : i64, tpu.core_type = #tpu.core_type<tc>, window_params = [{transform_indices = @transform_0, window_bounds = array<i64: 16, 32>}, {transform_indices = @transform_1, window_bounds = array<i64: 32, 128>}, {transform_indices = @transform_2, window_bounds = array<i64: 1, 128>}, {transform_indices = @transform_3, window_bounds = array<i64: 128, 32>}, {pipeline_mode = #tpu.pipeline_mode<synchronous>, transform_indices = @transform_4, window_bounds = array<i64: 1, 32>}, {transform_indices = @transform_5, window_bounds = array<i64: 16, 32>}]} {
    %c0_i32 = arith.constant 0 : i32
    %0 = arith.cmpi eq, %arg1, %c0_i32 : i32
    %1 = arith.extui %0 : i1 to i32
    %c0_i32_0 = arith.constant 0 : i32
    %2 = arith.cmpi ne, %1, %c0_i32_0 : i32
    scf.if %2 {
      %cst_18 = arith.constant 0.000000e+00 : f32
      %25 = vector.broadcast %cst_18 : f32 to vector<16x32xf32>
      %c0_19 = arith.constant 0 : index
      %c0_20 = arith.constant 0 : index
      %26 = vector.load %arg8[%c0_19, %c0_20] : memref<16x32xf32, #tpu.memory_space<vmem>>, vector<16x32xf32>
      tpu.vector_store %arg8[%c0_19, %c0_20], %25 {strides = array<i32>} : memref<16x32xf32, #tpu.memory_space<vmem>>, vector<16x32xf32>,
    } else {
    }
    %c0 = arith.constant 0 : index
    %c0_1 = arith.constant 0 : index
    %3 = vector.load %arg2[%c0, %c0_1] : memref<16x32xf32, #tpu.memory_space<vmem>>, vector<16x32xf32>
    %c0_2 = arith.constant 0 : index
    %c0_3 = arith.constant 0 : index
    %4 = vector.load %arg3[%c0_2, %c0_3] : memref<32x128xf32, #tpu.memory_space<vmem>>, vector<32x128xf32>
    %cst = arith.constant dense<0.000000e+00> : vector<16x128xf32>
    %5 = tpu.matmul %3, %4, %cst {dimension_numbers = #tpu.dot_dimension_numbers<[1], [0], [0], [1], [0, 0, 1, 1], [], []>} : vector<16x32xf32>, vector<32x128xf32>, vector<16x128xf32> -> vector<16x128xf32>
    %c0_4 = arith.constant 0 : index
    %c0_5 = arith.constant 0 : index
    %6 = vector.load %arg4[%c0_4, %c0_5] : memref<1x128xf32, #tpu.memory_space<vmem>>, vector<1x128xf32>
    %7 = vector.broadcast %6 : vector<1x128xf32> to vector<16x128xf32>
    %8 = arith.addf %5, %7 : vector<16x128xf32>
    %cst_6 = arith.constant 5.000000e-01 : f32
    %9 = vector.broadcast %cst_6 : f32 to vector<16x128xf32>
    %10 = arith.mulf %9, %8 : vector<16x128xf32>
    %cst_7 = arith.constant 0.707106769 : f32
    %11 = vector.broadcast %cst_7 : f32 to vector<16x128xf32>
    %12 = arith.mulf %8, %11 : vector<16x128xf32>
    %13 = math.erf %12 : vector<16x128xf32>
    %cst_8 = arith.constant 1.000000e+00 : f32
    %14 = vector.broadcast %cst_8 : f32 to vector<16x128xf32>
    %15 = arith.addf %14, %13 : vector<16x128xf32>
    %16 = arith.mulf %10, %15 : vector<16x128xf32>
    %c0_9 = arith.constant 0 : index
    %c0_10 = arith.constant 0 : index
    %17 = vector.load %arg8[%c0_9, %c0_10] : memref<16x32xf32, #tpu.memory_space<vmem>>, vector<16x32xf32>
    %c0_11 = arith.constant 0 : index
    %c0_12 = arith.constant 0 : index
    %18 = vector.load %arg5[%c0_11, %c0_12] : memref<128x32xf32, #tpu.memory_space<vmem>>, vector<128x32xf32>
    %cst_13 = arith.constant dense<0.000000e+00> : vector<16x32xf32>
    %19 = tpu.matmul %16, %18, %cst_13 {dimension_numbers = #tpu.dot_dimension_numbers<[1], [0], [0], [1], [0, 0, 1, 1], [], []>} : vector<16x128xf32>, vector<128x32xf32>, vector<16x32xf32> -> vector<16x32xf32>
    %20 = arith.addf %17, %19 : vector<16x32xf32>
    %c0_14 = arith.constant 0 : index
    %c0_15 = arith.constant 0 : index
    %21 = vector.load %arg8[%c0_14, %c0_15] : memref<16x32xf32, #tpu.memory_space<vmem>>, vector<16x32xf32>
    tpu.vector_store %arg8[%c0_14, %c0_15], %20 {strides = array<i32>} : memref<16x32xf32, #tpu.memory_space<vmem>>, vector<16x32xf32>,
    %c0_i32_16 = arith.constant 0 : i32
    %22 = arith.cmpi eq, %arg1, %c0_i32_16 : i32
    %23 = arith.extui %22 : i1 to i32
    %c0_i32_17 = arith.constant 0 : i32
    %24 = arith.cmpi ne, %23, %c0_i32_17 : i32
    scf.if %24 {
      %c0_18 = arith.constant 0 : index
      %c0_19 = arith.constant 0 : index
      %25 = vector.load %arg8[%c0_18, %c0_19] : memref<16x32xf32, #tpu.memory_space<vmem>>, vector<16x32xf32>
      %c0_20 = arith.constant 0 : index
      %c0_21 = arith.constant 0 : index
      %26 = vector.load %arg6[%c0_20, %c0_21] : memref<1x32xf32, #tpu.memory_space<vmem>>, vector<1x32xf32>
      %27 = vector.broadcast %26 : vector<1x32xf32> to vector<16x32xf32>
      %28 = arith.addf %25, %27 : vector<16x32xf32>
      %c0_22 = arith.constant 0 : index
      %c0_23 = arith.constant 0 : index
      %29 = vector.load %arg7[%c0_22, %c0_23] : memref<16x32xf32, #tpu.memory_space<vmem>>, vector<16x32xf32>
      tpu.vector_store %arg7[%c0_22, %c0_23], %28 {strides = array<i32>} : memref<16x32xf32, #tpu.memory_space<vmem>>, vector<16x32xf32>,
    } else {
    }
    return
  }
  func.func @transform_0(%arg0: i32, %arg1: i32) -> (i32, i32) {
    %c0_i32 = arith.constant 0 : i32
    %c0_i32_0 = arith.constant 0 : i32
    return %arg0, %c0_i32 : i32, i32
  }
  func.func @transform_1(%arg0: i32, %arg1: i32) -> (i32, i32) {
    %c0_i32 = arith.constant 0 : i32
    %c0_i32_0 = arith.constant 0 : i32
    return %c0_i32, %arg1 : i32, i32
  }
  func.func @transform_2(%arg0: i32, %arg1: i32) -> (i32, i32) {
    %c0_i32 = arith.constant 0 : i32
    %c0_i32_0 = arith.constant 0 : i32
    return %c0_i32, %arg1 : i32, i32
  }
  func.func @transform_3(%arg0: i32, %arg1: i32) -> (i32, i32) {
    %c0_i32 = arith.constant 0 : i32
    %c0_i32_0 = arith.constant 0 : i32
    return %arg1, %c0_i32 : i32, i32
  }
  func.func @transform_4(%arg0: i32, %arg1: i32) -> (i32, i32) {
    %c0_i32 = arith.constant 0 : i32
    %c0_i32_0 = arith.constant 0 : i32
    %c0_i32_1 = arith.constant 0 : i32
    return %c0_i32, %c0_i32_0 : i32, i32
  }
  func.func @transform_5(%arg0: i32, %arg1: i32) -> (i32, i32) {
    %c0_i32 = arith.constant 0 : i32
    %c0_i32_0 = arith.constant 0 : i32
    return %arg0, %c0_i32 : i32, i32
  }
}

</mosaic_0001>

<bundles_post_ra>
// kernel: _expert_call.1
= control target key start
LH: loop header
LB: loop body
LE: loop exit
PB: predicated region body
PF: predicated region fallthrough
CT: control target
= control target key end

     0   :  { %vm25_vm0 = vcmask 261120   ;;  %s483_s0 = inlined_call_operand.vmem [shape: f32[16,32], index: 0, kind: input, shape index: {}]   ;;  %s484_s1 = inlined_call_operand.vmem [shape: f32[32,128], index: 1, kind: input, shape index: {}]   ;;  %s485_s2 = inlined_call_operand.vmem [shape: f32[1,128], index: 2, kind: input, shape index: {}]   ;;  %s486_s3 = inlined_call_operand.vmem [shape: f32[128,32], index: 3, kind: input, shape index: {}]   ;;  %s487_s4 = inlined_call_operand.vmem [shape: f32[1,32], index: 4, kind: input, shape index: {}]   ;;  %s488_s5 = inlined_call_operand.hbm [shape: f32[16,32], index: 5, kind: output, shape index: {}]  }
   0x1   :  { %v33_v0 = vld [vmem:[%s484_s1 + $0x18] sm:$0xff]  ;;  %v32_v1 = vld [vmem:[%s484_s1 + $0x10] sm:$0xff]  ;;  %v28_v2 = vld [vmem:[%s483_s0] sm:$0xff] }
   0x2   :  { %290 = vmatprep.subr.mxu0 %v33_v0  ;;  %v31_v3 = vld [vmem:[%s484_s1 + $0x8] sm:$0xff]  ;;  %298 = vmatprep.mubr.msk.f32.mxu0 %vm25_vm0, %v28_v2  ;;  %v150_v4 = vld [vmem:[%s486_s3 + $0x78] sm:$0xff]  ;;  %v149_v5 = vld [vmem:[%s486_s3 + $0x70] sm:$0xff] }
   0x3   :  { %291 = vmatpush3.msra.mxu0 %v33_v0  ;;  %301 = vmatprep.subr.mxu1 %v150_v4 }
   0x4   :  { %292 = vmatprep.subr.mxu0 %v32_v1 }
   0x5   :  { %10 = vsyncpa [#allocation4], 0  ;;  %293 = vmatpush3.msra.mxu0 %v32_v1  ;;  %v30_v6 = vld [vmem:[%s484_s1] sm:$0xff]  ;;  %302 = vmatpush3.msra.mxu1 %v150_v4  ;;  %v148_v7 = vld [vmem:[%s486_s3 + $0x68] sm:$0xff]  ;;  %v366_v22 = vmov 0.0   ;;  %s367_s11 = smov [#allocation3]  }
   0x6   :  { %294 = vmatprep.subr.mxu0 %v31_v3  ;;  %303 = vmatprep.subr.mxu1 %v149_v5  ;;  %v29_v8 = vld [vmem:[%s483_s0 + $0x8] sm:$0xff]  ;;  %v147_v9 = vld [vmem:[%s486_s3 + $0x60] sm:$0xff]  ;;  %v146_v10 = vld [vmem:[%s486_s3 + $0x58] sm:$0xff]  ;;  %27 = vst.msk [vmem:[#allocation2 + $0x8] sm:$0xff] %vm25_vm0, %v366_v22  ;;  %s251_s12 = sshll.u32 %s367_s11, 4  ;;  %s252_s12 = int_to_ptr.vmem [resolvable:$true] %s251_s12 }
   0x7   :  { %295 = vmatpush3.msra.mxu0 %v31_v3  ;;  %304 = vmatpush3.msra.mxu1 %v149_v5  ;;  %v145_v11 = vld [vmem:[%s486_s3 + $0x50] sm:$0xff]  ;;  %v144_v12 = vld [vmem:[%s486_s3 + $0x48] sm:$0xff]  ;;  %v143_v13 = vld [vmem:[%s486_s3 + $0x40] sm:$0xff]  ;;  %26 = vst.msk [vmem:[#allocation2] sm:$0xff] %vm25_vm0, %v366_v22  ;;  %s344_s13 = scalar_lea.vmem %s252_s12, 256  ;;  %p349_p1 = scmp.lt.s32.totalorder %s252_s12, %s252_s12 }
   0x8   :  { %296 = vmatprep.subr.mxu0 %v30_v6  ;;  %305 = vmatprep.subr.mxu1 %v148_v7  ;;  %v142_v14 = vld [vmem:[%s486_s3 + $0x38] sm:$0xff]  ;;  %v141_v15 = vld [vmem:[%s486_s3 + $0x30] sm:$0xff]  ;;  %v140_v16 = vld [vmem:[%s486_s3 + $0x28] sm:$0xff]  ;;  %p345_p0 = scmp.ne.s32.totalorder %s252_s12, %s344_s13  ;;  %p350_p2 = scmp.lt.s32.totalorder %s344_s13, %s344_s13 }
   0x9   :  { %297 = vmatpush3.msra.mxu0 %v30_v6  ;;  %306 = vmatpush3.msra.mxu1 %v148_v7  ;;  %v139_v17 = vld [vmem:[%s486_s3 + $0x20] sm:$0xff]  ;;  %v138_v18 = vld [vmem:[%s486_s3 + $0x18] sm:$0xff]  ;;  %v137_v19 = vld [vmem:[%s486_s3 + $0x10] sm:$0xff] }
   0xa   :  { %299 = vmatmul.mubr.msk.f32.vlgmr.msra.gmra.mxu0 %vm25_vm0, %v29_v8  ;;  %307 = vmatprep.subr.mxu1 %v147_v9  ;;  %v136_v20 = vld [vmem:[%s486_s3 + $0x8] sm:$0xff]  ;;  %v135_v21 = vld [vmem:[%s486_s3] sm:$0xff]  ;;  %p351_p3 = por %p350_p2, %p349_p1 }
   0xb   :  { %308 = vmatpush3.msra.mxu1 %v147_v9  ;;  %v262_v23 = vld [vmem:[%s485_s2] ss:$0 sm:$0xff] }
   0xc   :  { %309 = vmatprep.subr.mxu1 %v146_v10  ;;  %v265_v44 = vld [vmem:[%s487_s4] ss:$0 sm:$0xff]  ;;  %p352_p4 = pnand %p351_p3, %p345_p0 }
   0xd   :  { %310 = vmatpush3.msra.mxu1 %v146_v10  ;;  %v134_v38 = vld [vmem:[#allocation2 + $0x8] sm:$0xff] }
   0xe   :  { %311 = vmatprep.subr.mxu1 %v145_v11  ;;  %v133_v40 = vld [vmem:[#allocation2] sm:$0xff] }
   0xf   :  { %312 = vmatpush3.msra.mxu1 %v145_v11 }
  0x10   :  { %313 = vmatprep.subr.mxu1 %v144_v12 }
  0x11   :  { %314 = vmatpush3.msra.mxu1 %v144_v12 }
  0x12   :  { %315 = vmatprep.subr.mxu1 %v143_v13 }
  0x13   :  { %316 = vmatpush3.msra.mxu1 %v143_v13 }
  0x14   :  { %317 = vmatprep.subr.mxu1 %v142_v14 }
  0x15   :  { %318 = vmatpush3.msra.mxu1 %v142_v14 }
  0x16   :  { %319 = vmatprep.subr.mxu1 %v141_v15 }
  0x17   :  { %320 = vmatpush3.msra.mxu1 %v141_v15 }
  0x18   :  { %321 = vmatprep.subr.mxu1 %v140_v16 }
  0x19   :  { %322 = vmatpush3.msra.mxu1 %v140_v16 }
  0x1a   :  { %323 = vmatprep.subr.mxu1 %v139_v17 }
  0x1b   :  { %324 = vmatpush3.msra.mxu1 %v139_v17 }
  0x1c   :  { %325 = vmatprep.subr.mxu1 %v138_v18 }
  0x1d   :  { %326 = vmatpush3.msra.mxu1 %v138_v18 }
  0x1e   :  { %327 = vmatprep.subr.mxu1 %v137_v19 }
  0x1f   :  { %328 = vmatpush3.msra.mxu1 %v137_v19 }
  0x20   :  { %329 = vmatprep.subr.mxu1 %v136_v20 }
  0x21   :  { %330 = vmatpush3.msra.mxu1 %v136_v20 }
  0x22   :  { %331 = vmatprep.subr.mxu1 %v135_v21 }
  0x23   :  { %332 = vmatpush3.msra.mxu1 %v135_v21 }
  0xca   :  { %v300_v24 = vpop.f32.mrf.mxu0 }
  0xcb   :  { %v120_v25 = vadd.f32 %v300_v24, %v262_v23 }
  0xcc   :  { %v114_v26 = vpop.f32.mrf.mxu0 }
  0xcd   :  { %v126_v27 = vmul.f32 0.70710677, %v120_v25  ;;  %v115_v28 = vadd.f32 %v262_v23, %v114_v26  ;;  %v124_v35 = vmul.f32 0.5, %v120_v25 }
  0xcf   :  { %340 = verf.f32 %v126_v27  ;;  %v125_v29 = vmul.f32 0.70710677, %v115_v28  ;;  %v123_v33 = vmul.f32 0.5, %v115_v28 }
  0xd1   :  { %342 = verf.f32 %v125_v29 }
  0xdc   :  { %v341_v30 = vpop.eup %340 }
  0xdd   :  { %v130_v32 = vadd.f32 1.0, %v341_v30 }
  0xde   :  { %v343_v31 = vpop.eup %342 }
  0xdf   :  { %v129_v34 = vadd.f32 1.0, %v343_v31  ;;  %v132_v37 = vmul.f32 %v130_v32, %v124_v35 }
  0xe1   :  { %v131_v36 = vmul.f32 %v129_v34, %v123_v33 }
  0xe3   :  { %333 = vmatprep.mubr.f32.mxu1 %v131_v36 }
  0xe4   :  { %334 = vmatmul.mubr.f32.vlgmr.msra.gmra.mxu1 %v132_v37 }
 0x1a4   :  { %v335_v39 = vpop.f32.mrf.mxu1 }
 0x1a5   :  { %v227_v41 = vadd.f32 %v335_v39, %v134_v38 }
 0x1a6   :  { %v217_v42 = vpop.f32.mrf.mxu1 }
 0x1a7   :  { %229 = vst.msk [vmem:[#allocation2 + $0x8] sm:$0xff] %vm25_vm0, %v227_v41  ;;  %v226_v43 = vadd.f32 %v217_v42, %v133_v40 }
 0x1a9   :  { %228 = vst.msk [vmem:[#allocation2] sm:$0xff] %vm25_vm0, %v226_v43 }
 0x1ae   :  { %v234_v45 = vld [vmem:[#allocation2 + $0x8] sm:$0xff] }
 0x1af   :  { %v243_v46 = vadd.f32 %v265_v44, %v234_v45 }
 0x1b0   :  { %v233_v47 = vld [vmem:[#allocation2] sm:$0xff] }
 0x1b1   :  { %v242_v48 = vadd.f32 %v265_v44, %v233_v47  ;;  %245 = vst.msk [vmem:[#allocation3 + $0x8] sm:$0xff] %vm25_vm0, %v243_v46 }
 0x1b3   :  { %244 = vst.msk [vmem:[#allocation3] sm:$0xff] %vm25_vm0, %v242_v48 }
 0x1b4   :  { %355 = shalt.err (!%p352_p4)
}
 0x1b5   :  { %s368_s0 = smov 128   ;;  %s369_s4 = smov 8  }
 0x1b6   :  { %257 = dma.vmem_to_hbm [thread:$0]  %s252_s12, 256, %s488_s5, [#allocation4], %s368_s0, %s368_s0, %s369_s4  }
 0x1b7   :  { %364 = dma.done.wait [#allocation4], 256  }
 0x1b8   :  { %365 = vsyncadd [#allocation4], 4294967040 }
 0x1b9   :  { %261 = vsyncpa [#allocation4], 1 }

// kernel: _expert_call.1
= control target key start
LH: loop header
LB: loop body
LE: loop exit
PB: predicated region body
PF: predicated region fallthrough
CT: control target
= control target key end

     0   :  { %vm25_vm0 = vcmask 261120   ;;  %s483_s0 = inlined_call_operand.vmem [shape: f32[16,32], index: 0, kind: input, shape index: {}]   ;;  %s484_s1 = inlined_call_operand.vmem [shape: f32[32,128], index: 1, kind: input, shape index: {}]   ;;  %s485_s2 = inlined_call_operand.vmem [shape: f32[1,128], index: 2, kind: input, shape index: {}]   ;;  %s486_s3 = inlined_call_operand.vmem [shape: f32[128,32], index: 3, kind: input, shape index: {}]   ;;  %s487_s4 = inlined_call_operand.vmem [shape: f32[1,32], index: 4, kind: input, shape index: {}]   ;;  %s488_s5 = inlined_call_operand.hbm [shape: f32[16,32], index: 5, kind: output, shape index: {}]  }
   0x1   :  { %v33_v0 = vld [vmem:[%s484_s1 + $0x18] sm:$0xff]  ;;  %v32_v1 = vld [vmem:[%s484_s1 + $0x10] sm:$0xff]  ;;  %v28_v2 = vld [vmem:[%s483_s0] sm:$0xff] }
   0x2   :  { %290 = vmatprep.subr.mxu0 %v33_v0  ;;  %v31_v3 = vld [vmem:[%s484_s1 + $0x8] sm:$0xff]  ;;  %298 = vmatprep.mubr.msk.f32.mxu0 %vm25_vm0, %v28_v2  ;;  %v150_v4 = vld [vmem:[%s486_s3 + $0x78] sm:$0xff]  ;;  %v149_v5 = vld [vmem:[%s486_s3 + $0x70] sm:$0xff] }
   0x3   :  { %291 = vmatpush3.msra.mxu0 %v33_v0  ;;  %301 = vmatprep.subr.mxu1 %v150_v4 }
   0x4   :  { %292 = vmatprep.subr.mxu0 %v32_v1 }
   0x5   :  { %10 = vsyncpa [#allocation4], 0  ;;  %293 = vmatpush3.msra.mxu0 %v32_v1  ;;  %v30_v6 = vld [vmem:[%s484_s1] sm:$0xff]  ;;  %302 = vmatpush3.msra.mxu1 %v150_v4  ;;  %v148_v7 = vld [vmem:[%s486_s3 + $0x68] sm:$0xff]  ;;  %v366_v22 = vmov 0.0   ;;  %s367_s11 = smov [#allocation3]  }
   0x6   :  { %294 = vmatprep.subr.mxu0 %v31_v3  ;;  %303 = vmatprep.subr.mxu1 %v149_v5  ;;  %v29_v8 = vld [vmem:[%s483_s0 + $0x8] sm:$0xff]  ;;  %v147_v9 = vld [vmem:[%s486_s3 + $0x60] sm:$0xff]  ;;  %v146_v10 = vld [vmem:[%s486_s3 + $0x58] sm:$0xff]  ;;  %27 = vst.msk [vmem:[#allocation2 + $0x8] sm:$0xff] %vm25_vm0, %v366_v22  ;;  %s251_s12 = sshll.u32 %s367_s11, 4  ;;  %s252_s12 = int_to_ptr.vmem [resolvable:$true] %s251_s12 }
   0x7   :  { %295 = vmatpush3.msra.mxu0 %v31_v3  ;;  %304 = vmatpush3.msra.mxu1 %v149_v5  ;;  %v145_v11 = vld [vmem:[%s486_s3 + $0x50] sm:$0xff]  ;;  %v144_v12 = vld [vmem:[%s486_s3 + $0x48] sm:$0xff]  ;;  %v143_v13 = vld [vmem:[%s486_s3 + $0x40] sm:$0xff]  ;;  %26 = vst.msk [vmem:[#allocation2] sm:$0xff] %vm25_vm0, %v366_v22  ;;  %s344_s13 = scalar_lea.vmem %s252_s12, 256  ;;  %p349_p1 = scmp.lt.s32.totalorder %s252_s12, %s252_s12 }
   0x8   :  { %296 = vmatprep.subr.mxu0 %v30_v6  ;;  %305 = vmatprep.subr.mxu1 %v148_v7  ;;  %v142_v14 = vld [vmem:[%s486_s3 + $0x38] sm:$0xff]  ;;  %v141_v15 = vld [vmem:[%s486_s3 + $0x30] sm:$0xff]  ;;  %v140_v16 = vld [vmem:[%s486_s3 + $0x28] sm:$0xff]  ;;  %p345_p0 = scmp.ne.s32.totalorder %s252_s12, %s344_s13  ;;  %p350_p2 = scmp.lt.s32.totalorder %s344_s13, %s344_s13 }
   0x9   :  { %297 = vmatpush3.msra.mxu0 %v30_v6  ;;  %306 = vmatpush3.msra.mxu1 %v148_v7  ;;  %v139_v17 = vld [vmem:[%s486_s3 + $0x20] sm:$0xff]  ;;  %v138_v18 = vld [vmem:[%s486_s3 + $0x18] sm:$0xff]  ;;  %v137_v19 = vld [vmem:[%s486_s3 + $0x10] sm:$0xff] }
   0xa   :  { %299 = vmatmul.mubr.msk.f32.vlgmr.msra.gmra.mxu0 %vm25_vm0, %v29_v8  ;;  %307 = vmatprep.subr.mxu1 %v147_v9  ;;  %v136_v20 = vld [vmem:[%s486_s3 + $0x8] sm:$0xff]  ;;  %v135_v21 = vld [vmem:[%s486_s3] sm:$0xff]  ;;  %p351_p3 = por %p350_p2, %p349_p1 }
   0xb   :  { %308 = vmatpush3.msra.mxu1 %v147_v9  ;;  %v262_v23 = vld [vmem:[%s485_s2] ss:$0 sm:$0xff] }
   0xc   :  { %309 = vmatprep.subr.mxu1 %v146_v10  ;;  %v265_v44 = vld [vmem:[%s487_s4] ss:$0 sm:$0xff]  ;;  %p352_p4 = pnand %p351_p3, %p345_p0 }
   0xd   :  { %310 = vmatpush3.msra.mxu1 %v146_v10  ;;  %v134_v38 = vld [vmem:[#allocation2 + $0x8] sm:$0xff] }
   0xe   :  { %311 = vmatprep.subr.mxu1 %v145_v11  ;;  %v133_v40 = vld [vmem:[#allocation2] sm:$0xff] }
   0xf   :  { %312 = vmatpush3.msra.mxu1 %v145_v11 }
  0x10   :  { %313 = vmatprep.subr.mxu1 %v144_v12 }
  0x11   :  { %314 = vmatpush3.msra.mxu1 %v144_v12 }
  0x12   :  { %315 = vmatprep.subr.mxu1 %v143_v13 }
  0x13   :  { %316 = vmatpush3.msra.mxu1 %v143_v13 }
  0x14   :  { %317 = vmatprep.subr.mxu1 %v142_v14 }
  0x15   :  { %318 = vmatpush3.msra.mxu1 %v142_v14 }
  0x16   :  { %319 = vmatprep.subr.mxu1 %v141_v15 }
  0x17   :  { %320 = vmatpush3.msra.mxu1 %v141_v15 }
  0x18   :  { %321 = vmatprep.subr.mxu1 %v140_v16 }
  0x19   :  { %322 = vmatpush3.msra.mxu1 %v140_v16 }
  0x1a   :  { %323 = vmatprep.subr.mxu1 %v139_v17 }
  0x1b   :  { %324 = vmatpush3.msra.mxu1 %v139_v17 }
  0x1c   :  { %325 = vmatprep.subr.mxu1 %v138_v18 }
  0x1d   :  { %326 = vmatpush3.msra.mxu1 %v138_v18 }
  0x1e   :  { %327 = vmatprep.subr.mxu1 %v137_v19 }
  0x1f   :  { %328 = vmatpush3.msra.mxu1 %v137_v19 }
  0x20   :  { %329 = vmatprep.subr.mxu1 %v136_v20 }
  0x21   :  { %330 = vmatpush3.msra.mxu1 %v136_v20 }
  0x22   :  { %331 = vmatprep.subr.mxu1 %v135_v21 }
  0x23   :  { %332 = vmatpush3.msra.mxu1 %v135_v21 }
  0xca   :  { %v300_v24 = vpop.f32.mrf.mxu0 }
  0xcb   :  { %v120_v25 = vadd.f32 %v300_v24, %v262_v23 }
  0xcc   :  { %v114_v26 = vpop.f32.mrf.mxu0 }
  0xcd   :  { %v126_v27 = vmul.f32 0.70710677, %v120_v25  ;;  %v115_v28 = vadd.f32 %v262_v23, %v114_v26  ;;  %v124_v35 = vmul.f32 0.5, %v120_v25 }
  0xcf   :  { %340 = verf.f32 %v126_v27  ;;  %v125_v29 = vmul.f32 0.70710677, %v115_v28  ;;  %v123_v33 = vmul.f32 0.5, %v115_v28 }
  0xd1   :  { %342 = verf.f32 %v125_v29 }
  0xdc   :  { %v341_v30 = vpop.eup %340 }
  0xdd   :  { %v130_v32 = vadd.f32 1.0, %v341_v30 }
  0xde   :  { %v343_v31 = vpop.eup %342 }
  0xdf   :  { %v129_v34 = vadd.f32 1.0, %v343_v31  ;;  %v132_v37 = vmul.f32 %v130_v32, %v124_v35 }
  0xe1   :  { %v131_v36 = vmul.f32 %v129_v34, %v123_v33 }
  0xe3   :  { %333 = vmatprep.mubr.f32.mxu1 %v131_v36 }
  0xe4   :  { %334 = vmatmul.mubr.f32.vlgmr.msra.gmra.mxu1 %v132_v37 }
 0x1a4   :  { %v335_v39 = vpop.f32.mrf.mxu1 }
 0x1a5   :  { %v227_v41 = vadd.f32 %v335_v39, %v134_v38 }
 0x1a6   :  { %v217_v42 = vpop.f32.mrf.mxu1 }
 0x1a7   :  { %229 = vst.msk [vmem:[#allocation2 + $0x8] sm:$0xff] %vm25_vm0, %v227_v41  ;;  %v226_v43 = vadd.f32 %v217_v42, %v133_v40 }
 0x1a9   :  { %228 = vst.msk [vmem:[#allocation2] sm:$0xff] %vm25_vm0, %v226_v43 }
 0x1ae   :  { %v234_v45 = vld [vmem:[#allocation2 + $0x8] sm:$0xff] }
 0x1af   :  { %v243_v46 = vadd.f32 %v265_v44, %v234_v45 }
 0x1b0   :  { %v233_v47 = vld [vmem:[#allocation2] sm:$0xff] }
 0x1b1   :  { %v242_v48 = vadd.f32 %v265_v44, %v233_v47  ;;  %245 = vst.msk [vmem:[#allocation3 + $0x8] sm:$0xff] %vm25_vm0, %v243_v46 }
 0x1b3   :  { %244 = vst.msk [vmem:[#allocation3] sm:$0xff] %vm25_vm0, %v242_v48 }
 0x1b4   :  { %355 = shalt.err (!%p352_p4)
}
 0x1b5   :  { %s368_s0 = smov 128   ;;  %s369_s4 = smov 8  }
 0x1b6   :  { %257 = dma.vmem_to_hbm [thread:$0]  %s252_s12, 256, %s488_s5, [#allocation4], %s368_s0, %s368_s0, %s369_s4  }
 0x1b7   :  { %364 = dma.done.wait [#allocation4], 256  }
 0x1b8   :  { %365 = vsyncadd [#allocation4], 4294967040 }
 0x1b9   :  { %261 = vsyncpa [#allocation4], 1 }

</bundles_post_ra>
